<compile_context>
chip_gen: v7x
topology: tpu7x:2x2x1
jax: 0.10.0
libtpu: 0.0.40
codegen_flags: <defaults>
</compile_context>

<pallas_src>
import functools
from math import sqrt, ceil, log

import jax
import jax.numpy as jnp
from jax.experimental import pallas as pl
from jax.experimental.pallas import tpu as pltpu


# --------------------------------------------------------------------------------------
# Kernel 1: sparsity measurement M for a tile of TQ queries of one (batch, head).
#   qk_t[j, l]   = K[j] · Q[l]                       (MXU, (L_K, D) x (TQ, D)^T)
#   sampled_sum  = sum_j qk_t[j, l] * cnt[j, l]      (cnt = sample multiplicities)
#   sampled_max  = max_j over {cnt > 0} qk_t[j, l]
#   M[l]         = sampled_max - sampled_sum / L_K
# Grid = (B, H, num_q_tiles): the K slab's block index only depends on (b, h), so it
# stays VMEM-resident across the inner query-tile iterations.
# --------------------------------------------------------------------------------------
def _sparsity_kernel(l_k, q_ref, k_ref, cnt_ref, m_ref):
    # q_ref: (TQ, D) f32, k_ref: (L_K, D) f32, cnt_ref: (L_K, TQ) bf16, m_ref: (1, TQ)
    q = q_ref[...]
    k = k_ref[...]
    cnt = cnt_ref[...].astype(jnp.float32)   # counts <= U_part are exact in bf16

    qk_t = jax.lax.dot_general(k, q, (((1,), (1,)), ((), ())),
                               preferred_element_type=jnp.float32)      # (L_K, TQ)

    sampled_sum = jnp.sum(qk_t * cnt, axis=0, keepdims=True)            # (1, TQ)
    sampled_max = jnp.max(jnp.where(cnt > 0.0, qk_t, -jnp.inf),
                          axis=0, keepdims=True)                        # (1, TQ)
    m_ref[...] = sampled_max - sampled_sum * (1.0 / float(l_k))


# --------------------------------------------------------------------------------------
# Kernel 2: per (batch, head):
#   scores = (Q_reduce @ K^T) * scale, ProbMask fill(-inf), softmax (exact divide),
#   attn @ V, initial context = cumsum(V) computed as a TILED prefix sum (running
#   (1, D) row-sum + per-chunk (TC,TC) triangular matmul), updated rows scattered via a
#   one-hot matmul.  O(L*TC*D) work, constant small VMEM footprint.
# --------------------------------------------------------------------------------------
def _attn_update_kernel(scale, tc, n_chunks, unroll,
                        qr_ref, k_ref, v_ref, idxc_ref, idxr_ref,
                        attn_ref, ctx_ref):
    u = qr_ref.shape[0]
    L_K = k_ref.shape[0]
    L_Q, D = ctx_ref.shape

    qr = qr_ref[...]
    k = k_ref[...]
    idx_col = idxc_ref[...]           # (u, 1) int32
    idx_row = idxr_ref[...]           # (1, u) int32

    # scores = (Q_reduce @ K^T) * scale
    scores = jax.lax.dot_general(qr, k, (((1,), (1,)), ((), ())),
                                 preferred_element_type=jnp.float32) * scale  # (u, L_K)

    # ProbMask: mask[i, j] = j > index[i]  -> fill with -inf.
    # (-inf is safe: index[i] >= 0 guarantees column 0 is always unmasked.)
    col = jax.lax.broadcasted_iota(jnp.int32, (u, L_K), 1)
    scores = jnp.where(col > idx_col, -jnp.inf, scores)

    # softmax over keys — exact divide (NOT pl.reciprocal(approx=True)); attention is a
    # returned output and the approximate reciprocal broke the parity tolerance.
    m = jnp.max(scores, axis=-1, keepdims=True)
    e = jnp.exp(scores - m)
    attn = e / jnp.sum(e, axis=-1, keepdims=True)
    attn_ref[...] = attn

    ctx_upd = jnp.dot(attn, v_ref[...], preferred_element_type=jnp.float32)   # (u, D)

    # Tiled prefix sum over V rows + scatter of the updated rows.
    # Constants hoisted out of the chunk loop (JAX does not CSE broadcasts).
    r_i = jax.lax.broadcasted_iota(jnp.int32, (tc, tc), 0)
    c_i = jax.lax.broadcasted_iota(jnp.int32, (tc, tc), 1)
    tri = (c_i <= r_i).astype(jnp.float32)                                    # (TC, TC)
    row_base = jax.lax.broadcasted_iota(jnp.int32, (tc, u), 0)                # (TC, u)

    def chunk_body(c, run_sum):                                # run_sum: (1, D) f32
        start = pl.multiple_of(c * tc, tc)
        v_c = v_ref[pl.ds(start, tc), :]                                      # (TC, D)
        # within-chunk inclusive cumsum + offset from previous chunks
        ctx0 = run_sum + jnp.dot(tri, v_c, preferred_element_type=jnp.float32)
        # scatter updated rows whose index falls in this chunk (topk indices unique)
        oh = (row_base + start == idx_row).astype(jnp.float32)                # (TC, u)
        scattered = jnp.dot(oh, ctx_upd, preferred_element_type=jnp.float32)  # (TC, D)
        has = jnp.sum(oh, axis=-1, keepdims=True)                             # (TC, 1)
        ctx_ref[pl.ds(start, tc), :] = jnp.where(has > 0.0, scattered, ctx0)
        return run_sum + jnp.sum(v_c, axis=0, keepdims=True)

    jax.lax.fori_loop(0, n_chunks, chunk_body,
                      jnp.zeros((1, D), jnp.float32), unroll=unroll)


# --------------------------------------------------------------------------------------
# Wrapper (glue: transposes, sample-count matrix, top-k selection, gathers)
# --------------------------------------------------------------------------------------
def prob_attention(queries, keys, values, index_sample, *, factor=5, scale=None):
    """ProbAttention.forward with mask_flag=True, output_attention=True.

    queries/keys/values: (B, L, H, D) float32 ; index_sample: (L_Q, U_part) int32.
    Returns (context (B, L_Q, H, D), attn (B, H, u, L_K), index (B, H, u)).
    """
    B, L_Q, H, D = queries.shape
    _, L_K, _, _ = keys.shape
    assert L_Q == L_K  # mask_flag=True path (cumsum context) requires L_Q == L_V

    q = jnp.transpose(queries, (0, 2, 1, 3)).astype(jnp.float32)  # (B, H, L_Q, D)
    k = jnp.transpose(keys,    (0, 2, 1, 3)).astype(jnp.float32)
    v = jnp.transpose(values,  (0, 2, 1, 3)).astype(jnp.float32)

    U_part = min(factor * int(ceil(log(L_K))), L_K)
    u_top = min(factor * int(ceil(log(L_Q))), L_Q)
    assert index_sample.shape == (L_Q, U_part)

    # ---- tiling choices ----
    TQ = L_Q if L_Q <= 128 else 128           # stage-1 query tile
    assert L_Q % TQ == 0                      # TODO(synk): pad/mask ragged query tiles
    TC = L_Q if L_Q <= 128 else 128           # stage-2 cumsum chunk (tri work ~ L*TC*D)
    assert L_Q % TC == 0
    num_q_tiles = L_Q // TQ
    n_chunks = L_Q // TC
    if n_chunks <= 8:
        chunk_unroll = n_chunks               # fully unroll short chunk loops
    elif n_chunks % 2 == 0:
        chunk_unroll = 2
    else:
        chunk_unroll = 1

    # Sample multiplicity matrix, shared across (b, h): cnt[l, j] = #{s: idx[l,s] == j}.
    # Stored bf16 (counts <= U_part are exactly representable -> zero numerical change,
    # half the HBM traffic of f32).  Replaces the (B,H,L_Q,U_part,D) K_sample gather.
    cnt = jnp.zeros((L_Q, L_K), jnp.float32)
    cnt = cnt.at[jnp.arange(L_Q)[:, None], index_sample].add(1.0)
    cnt_t = cnt.T.astype(jnp.bfloat16)                           # (L_K, L_Q)

    # ---- stage 1: sparsity measurement M (Pallas, K slab resident per (b, h)) ----
    m5 = pl.pallas_call(
        functools.partial(_sparsity_kernel, L_K),
        out_shape=jax.ShapeDtypeStruct((B, H, num_q_tiles, 1, TQ), jnp.float32),
        grid=(B, H, num_q_tiles),
        in_specs=[
            pl.BlockSpec((None, None, TQ, D), lambda b, h, i: (b, h, i, 0)),
            pl.BlockSpec((None, None, L_K, D), lambda b, h, i: (b, h, 0, 0)),
            pl.BlockSpec((L_K, TQ), lambda b, h, i: (0, i)),
        ],
        out_specs=pl.BlockSpec((None, None, None, 1, TQ),
                               lambda b, h, i: (b, h, i, 0, 0)),
        compiler_params=pltpu.CompilerParams(
            dimension_semantics=("parallel", "parallel", "arbitrary")),
    )(q, k, cnt_t)
    M = m5.reshape(B, H, L_Q)                                    # lane-dense output

    # top-u queries by sparsity measurement (glue; torch used topk(sorted=False))
    _, m_top = jax.lax.top_k(M, u_top)                           # (B, H, u)
    m_top = m_top.astype(jnp.int32)

    q_reduce = jnp.take_along_axis(q, m_top[..., None], axis=2)  # (B, H, u, D)
    idx_col = m_top[..., None]                                   # (B, H, u, 1)
    idx_row = m_top[:, :, None, :]                               # (B, H, 1, u)
    # TODO(synk): pass m_top via PrefetchScalarGridSpec (SMEM) instead of two padded
    # VMEM tiles once per-row SMEM->vreg broadcast of the index vector is worth it.

    scale_ = float(scale) if scale is not None else 1.0 / sqrt(D)

    # ---- stage 2: masked softmax attention + tiled-cumsum context update (Pallas) ----
    # Per-step VMEM: K + V + ctx + attn blocks (double-buffered) stay a few MiB even at
    # L=4096, D=64.  TODO(synk): set vmem_limit_bytes explicitly for L >= 8K on v5e.
    attn, context = pl.pallas_call(
        functools.partial(_attn_update_kernel, scale_, TC, n_chunks, chunk_unroll),
        out_shape=(
            jax.ShapeDtypeStruct((B, H, u_top, L_K), jnp.float32),
            jax.ShapeDtypeStruct((B, H, L_Q, D), jnp.float32),
        ),
        grid=(B, H),
        in_specs=[
            pl.BlockSpec((None, None, u_top, D), lambda b, h: (b, h, 0, 0)),
            pl.BlockSpec((None, None, L_K, D), lambda b, h: (b, h, 0, 0)),
            pl.BlockSpec((None, None, L_K, D), lambda b, h: (b, h, 0, 0)),
            pl.BlockSpec((None, None, u_top, 1), lambda b, h: (b, h, 0, 0)),
            pl.BlockSpec((None, None, 1, u_top), lambda b, h: (b, h, 0, 0)),
        ],
        out_specs=(
            pl.BlockSpec((None, None, u_top, L_K), lambda b, h: (b, h, 0, 0)),
            pl.BlockSpec((None, None, L_Q, D), lambda b, h: (b, h, 0, 0)),
        ),
        compiler_params=pltpu.CompilerParams(
            dimension_semantics=("parallel", "parallel")),
    )(q_reduce, k, v, idx_col, idx_row)

    context_out = jnp.transpose(context, (0, 2, 1, 3))           # (B, L_Q, H, D)
    return context_out, attn, m_top


# --------------------------------------------------------------------------------------
# Pure-JAX reference (mirrors the PyTorch forward exactly, given the same index_sample)
# --------------------------------------------------------------------------------------
def prob_attention_ref(queries, keys, values, index_sample, *, factor=5, scale=None):
    B, L_Q, H, D = queries.shape
    _, L_K, _, _ = keys.shape
    q = jnp.transpose(queries, (0, 2, 1, 3)).astype(jnp.float32)
    k = jnp.transpose(keys, (0, 2, 1, 3)).astype(jnp.float32)
    v = jnp.transpose(values, (0, 2, 1, 3)).astype(jnp.float32)
    u_top = min(factor * int(ceil(log(L_Q))), L_Q)

    k_sample = k[:, :, index_sample, :]
    qk_sample = jnp.einsum('bhle,bhlse->bhls', q, k_sample)
    M = qk_sample.max(-1) - qk_sample.sum(-1) / L_K
    _, m_top = jax.lax.top_k(M, u_top)

    q_reduce = jnp.take_along_axis(q, m_top[..., None], axis=2)
    scores = jnp.einsum('bhue,bhke->bhuk', q_reduce, k)
    sc = scale if scale is not None else 1.0 / sqrt(D)
    scores = scores * sc
    mask = jnp.arange(L_K)[None, None, None, :] > m_top[..., None]
    scores = jnp.where(mask, -jnp.inf, scores)
    attn = jax.nn.softmax(scores, axis=-1)
    ctx_upd = jnp.einsum('bhuk,bhkd->bhud', attn, v)
    ctx = jnp.cumsum(v, axis=2)
    oh = (jnp.arange(L_Q)[None, None, :, None]
          == m_top[:, :, None, :]).astype(jnp.float32)           # (B,H,L_Q,u)
    scattered = jnp.einsum('bhlu,bhud->bhld', oh, ctx_upd)
    has = oh.sum(-1) > 0
    ctx = jnp.where(has[..., None], scattered, ctx)
    return jnp.transpose(ctx, (0, 2, 1, 3)), attn, m_top


if __name__ == "__main__":
    B, L, H, D = 2, 16, 4, 8          # L_Q == L_K == L (mask_flag=True path)
    factor = 5
    U_part = min(factor * int(ceil(log(L))), L)

    key = jax.random.PRNGKey(0)
    kq, kk, kv, ks = jax.random.split(key, 4)
    queries = jax.random.normal(kq, (B, L, H, D), jnp.float32)
    keys_ = jax.random.normal(kk, (B, L, H, D), jnp.float32)
    values = jax.random.normal(kv, (B, L, H, D), jnp.float32)
    # deterministic stand-in for torch.randint(L_K, (L_Q, sample_k))
    index_sample = jax.random.randint(ks, (L, U_part), 0, L, dtype=jnp.int32)

    context, attn, index = prob_attention(queries, keys_, values, index_sample,
                                          factor=factor)
    jax.block_until_ready((context, attn, index))

    ctx_ref, attn_ref, idx_ref = prob_attention_ref(queries, keys_, values,
                                                    index_sample, factor=factor)
    err_ctx = float(jnp.max(jnp.abs(context - ctx_ref)))
    err_attn = float(jnp.max(jnp.abs(attn - attn_ref)))
    # exact-divide softmax + f32 everywhere: remaining error is MXU-vs-einsum and
    # tiled-vs-sequential cumsum reduction order (~1e-6 at these shapes).
    assert err_ctx < 1e-3 and err_attn < 1e-3, (err_ctx, err_attn)
    assert bool(jnp.all(index == idx_ref))

    print("KERNEL_OK")
</pallas_src>

<mosaic_0001>
module attributes {stable_mosaic.version = 11 : i64} {
  func.func @_sparsity_kernel(%arg0: i32, %arg1: i32, %arg2: i32, %arg3: memref<1x1x16x8xf32, #tpu.memory_space<vmem>>, %arg4: memref<1x1x16x8xf32, #tpu.memory_space<vmem>>, %arg5: memref<16x16xbf16, #tpu.memory_space<vmem>>, %arg6: memref<1x1x1x1x16xf32, #tpu.memory_space<vmem>>) attributes {dimension_semantics = [#tpu.dimension_semantics<parallel>, #tpu.dimension_semantics<parallel>, #tpu.dimension_semantics<arbitrary>], iteration_bounds = array<i64: 2, 4, 1>, scalar_prefetch = 0 : i64, scratch_operands = 0 : i64, tpu.core_type = #tpu.core_type<tc>, window_params = [{transform_indices = @transform_0, window_bounds = array<i64: 1, 1, 16, 8>}, {transform_indices = @transform_1, window_bounds = array<i64: 1, 1, 16, 8>}, {transform_indices = @transform_2, window_bounds = array<i64: 16, 16>}, {transform_indices = @transform_3, window_bounds = array<i64: 1, 1, 1, 1, 16>}]} {
    %c0 = arith.constant 0 : index
    %c0_0 = arith.constant 0 : index
    %c0_1 = arith.constant 0 : index
    %c0_2 = arith.constant 0 : index
    %0 = vector.load %arg3[%c0, %c0_0, %c0_1, %c0_2] : memref<1x1x16x8xf32, #tpu.memory_space<vmem>>, vector<1x1x16x8xf32>
    %1 = vector.shape_cast %0 : vector<1x1x16x8xf32> to vector<16x8xf32>
    %c0_3 = arith.constant 0 : index
    %c0_4 = arith.constant 0 : index
    %c0_5 = arith.constant 0 : index
    %c0_6 = arith.constant 0 : index
    %2 = vector.load %arg4[%c0_3, %c0_4, %c0_5, %c0_6] : memref<1x1x16x8xf32, #tpu.memory_space<vmem>>, vector<1x1x16x8xf32>
    %3 = vector.shape_cast %2 : vector<1x1x16x8xf32> to vector<16x8xf32>
    %c0_7 = arith.constant 0 : index
    %c0_8 = arith.constant 0 : index
    %4 = vector.load %arg5[%c0_7, %c0_8] : memref<16x16xbf16, #tpu.memory_space<vmem>>, vector<16x16xbf16>
    %5 = arith.extf %4 : vector<16x16xbf16> to vector<16x16xf32>
    %cst = arith.constant dense<0.000000e+00> : vector<16x16xf32>
    %6 = tpu.matmul %3, %1, %cst {dimension_numbers = #tpu.dot_dimension_numbers<[1], [1], [0], [0], [0, 0, 1, 0], [], []>} : vector<16x8xf32>, vector<16x8xf32>, vector<16x16xf32> -> vector<16x16xf32>
    %7 = arith.mulf %6, %5 : vector<16x16xf32>
    %cst_9 = arith.constant dense<0.000000e+00> : vector<16xf32>
    %8 = vector.multi_reduction <add>, %7, %cst_9 [0] : vector<16x16xf32> to vector<16xf32>
    %9 = vector.shape_cast %8 : vector<16xf32> to vector<1x16xf32>
    %cst_10 = arith.constant 0.000000e+00 : f32
    %10 = vector.broadcast %cst_10 : f32 to vector<16x16xf32>
    %11 = arith.cmpf ogt, %5, %10 : vector<16x16xf32>
    %cst_11 = arith.constant 0xFF800000 : f32
    %12 = vector.broadcast %cst_11 : f32 to vector<16x16xf32>
    %13 = arith.select %11, %6, %12 : vector<16x16xi1>, vector<16x16xf32>
    %cst_12 = arith.constant dense<0xFF800000> : vector<16xf32>
    %14 = vector.multi_reduction <maximumf>, %13, %cst_12 [0] : vector<16x16xf32> to vector<16xf32>
    %15 = vector.shape_cast %14 : vector<16xf32> to vector<1x16xf32>
    %cst_13 = arith.constant 6.250000e-02 : f32
    %16 = vector.broadcast %cst_13 : f32 to vector<1x16xf32>
    %17 = arith.mulf %9, %16 : vector<1x16xf32>
    %18 = arith.subf %15, %17 : vector<1x16xf32>
    %c0_14 = arith.constant 0 : index
    %c0_15 = arith.constant 0 : index
    %c0_16 = arith.constant 0 : index
    %c0_17 = arith.constant 0 : index
    %c0_18 = arith.constant 0 : index
    %19 = vector.load %arg6[%c0_14, %c0_15, %c0_16, %c0_17, %c0_18] : memref<1x1x1x1x16xf32, #tpu.memory_space<vmem>>, vector<1x1x1x1x16xf32>
    %20 = vector.shape_cast %19 : vector<1x1x1x1x16xf32> to vector<1x16xf32>
    %21 = vector.shape_cast %18 : vector<1x16xf32> to vector<1x1x1x1x16xf32>
    tpu.vector_store %arg6[%c0_14, %c0_15, %c0_16, %c0_17, %c0_18], %21 {strides = array<i32>} : memref<1x1x1x1x16xf32, #tpu.memory_space<vmem>>, vector<1x1x1x1x16xf32>,
    return
  }
  func.func @transform_0(%arg0: i32, %arg1: i32, %arg2: i32) -> (i32, i32, i32, i32) {
    %c0_i32 = arith.constant 0 : i32
    %c0_i32_0 = arith.constant 0 : i32
    return %arg0, %arg1, %arg2, %c0_i32 : i32, i32, i32, i32
  }
  func.func @transform_1(%arg0: i32, %arg1: i32, %arg2: i32) -> (i32, i32, i32, i32) {
    %c0_i32 = arith.constant 0 : i32
    %c0_i32_0 = arith.constant 0 : i32
    %c0_i32_1 = arith.constant 0 : i32
    return %arg0, %arg1, %c0_i32, %c0_i32_0 : i32, i32, i32, i32
  }
  func.func @transform_2(%arg0: i32, %arg1: i32, %arg2: i32) -> (i32, i32) {
    %c0_i32 = arith.constant 0 : i32
    %c0_i32_0 = arith.constant 0 : i32
    return %c0_i32, %arg2 : i32, i32
  }
  func.func @transform_3(%arg0: i32, %arg1: i32, %arg2: i32) -> (i32, i32, i32, i32, i32) {
    %c0_i32 = arith.constant 0 : i32
    %c0_i32_0 = arith.constant 0 : i32
    %c0_i32_1 = arith.constant 0 : i32
    return %arg0, %arg1, %arg2, %c0_i32, %c0_i32_0 : i32, i32, i32, i32, i32
  }
}

</mosaic_0001>

<bundles_post_ra>
// kernel: tpu_custom_call.1
= control target key start
LH: loop header
LB: loop body
LE: loop exit
PB: predicated region body
PF: predicated region fallthrough
CT: control target
= control target key end

     0   :  { %8 = vsyncpa [#allocation3], 0  ;;  %s905_s0 = inlined_call_operand.vmem [shape: f32[2,4,16,8], index: 0, kind: input, shape index: {}]   ;;  %s906_s1 = inlined_call_operand.vmem [shape: f32[2,4,16,8], index: 1, kind: input, shape index: {}]   ;;  %s907_s2 = inlined_call_operand.vmem [shape: bf16[16,16], index: 2, kind: input, shape index: {}]   ;;  %s908_s3 = inlined_call_operand.hbm [shape: f32[2,4,1,1,16], index: 3, kind: output, shape index: {}]  }
   0x1   :  { %10 = vsyncpa [#allocation3 + $0x1], 0  ;;  %s762_s12 = smov 0   ;;  %s764_s13 = smov 0  }
   0x2   :  { %s766_s14 = smov 0   ;;  %s768_s15 = smov 0  }
   0x3   :  { %s770_s16 = smov 0   ;;  %s772_s17 = smov 0  }
   0x4   :  { %s774_s18 = smov 0   ;;  %s776_s19 = smov 0  }
   0x5 LB: > { %s533_s20 = sadd.s32 4294967295, %s739_s19   ;;  %s534_s21 = sadd.s32 4294967294, %s739_s19   ;;  %s739_s19 = sphi %s776_s19, %s16_s19   ;;  %s735_s18 = sphi %s774_s18, %s917_s18   ;;  %s731_s17 = sphi %s772_s17, %s916_s17   ;;  %s727_s16 = sphi %s770_s16, %s915_s16   ;;  %s723_s15 = sphi %s768_s15, %s914_s15   ;;  %s719_s14 = sphi %s766_s14, %s913_s14   ;;  %s715_s13 = sphi %s764_s13, %s912_s13   ;;  %s711_s12 = sphi %s762_s12, %s911_s12  }
   0x6   : > { %s31_s22 = sadd.s32 1, %s731_s17  ;;  %s35_s23 = sadd.s32 1, %s735_s18 }
   0x7   : > { %p33_p0 = scmp.ge.s32.totalorder %s31_s22, 4  ;;  %p140_p1 = scmp.ne.s32.totalorder %s719_s14, %s715_s13 }
   0x8   : > { %p141_p2 = scmp.eq.s32.totalorder %s533_s20, 7  ;;  %p146_p5 = scmp.ne.s32.totalorder %s715_s13, %s711_s12 }
   0x9   : > { %s919_s22 = smov (%p33_p0, %s31_s22), 0  ;;  %s921_s23 = smov (!%p33_p0, %s35_s23), %s735_s18 }
   0xa   : > { %s124_s24 = ssub.s32 %s731_s17, %s919_s22  ;;  %p813_p3 = por %p141_p2, %p140_p1 }
   0xb   : > { %p37_p4 = scmp.ge.s32.totalorder %s921_s23, 2  ;;  %p147_p6 = scmp.eq.s32.totalorder %s534_s21, 7 }
   0xc   : > { %p538_p7 = scmp.ge.s32.totalorder %s739_s19, 1  ;;  %p201_p9 = scmp.lt.s32.totalorder %s739_s19, 9 }
   0xd   : > { %s923_s23 = smov (%p37_p4, %s921_s23), 0  ;;  %p822_p8 = por %p147_p6, %p146_p5 }
   0xe   : > { %s123_s27 = ssub.s32 %s735_s18, %s923_s23  ;;  %s130_s28 = sadd.s32 1, %s719_s14 }
   0xf   : > { %s125_s29 = sor.u32 %s124_s24, %s123_s27  ;;  %p202_p10 = pnand %p538_p7, %p201_p9 }
  0x10   : > { %p128_p11 = scmp.eq.s32.totalorder %s125_s29, 0  ;;  %p246_p12 = scmp.lt.s32.totalorder (!%p202_p10), %s727_s16, 1  ;;  %vm280_vm0 = vcmask (!%p202_p10), 64512   ;;  %v554_v5 = vld [vmem:[%s907_s2] sm:$0xff] (!%p202_p10)   ;;  %vm370_vm3 = vcmask (!%p202_p10), 130048   ;;  %vm395_vm5 = vcmask (!%p202_p10), 122880  }
  0x11   : > { %205 = sbr.rel (%p202_p10) target bundleno = 290 (0x122), region = 32  ;;  %p248_p13 = scmp.lt.s32.totalorder (!%p202_p10), %s723_s15, 3  ;;  %vm569_vm1 = vmpackc.low (!%p202_p10), %vm280_vm0, %vm280_vm0  ;;  %v556_v6 = vunpack.c.h.bf16 (!%p202_p10), %v554_v5  ;;  %v555_v7 = vunpack.c.l.bf16 (!%p202_p10), %v554_v5 }
  0x12   : > { %s831_s30 = scalar_select %p128_p11, %s719_s14, %s130_s28  }
  0x13   : > { %vm381_vm2 = vcmp.gt.f32.partialorder (!%p202_p10), %v556_v6, 0.0  ;;  %vm380_vm4 = vcmp.gt.f32.partialorder (!%p202_p10), %v555_v7, 0.0  ;;  %s741_s21 = smov (!%p202_p10), [#allocation2]  }
  0x14   : > { %s649_s24 = sshll.u32 (!%p202_p10), %s741_s21, 4  ;;  %s650_s24 = int_to_ptr.vmem [resolvable:$false] %s649_s24 }
  0x18   : > { %s247_s4 = scalar_select %p246_p12, %s727_s16, 1 }
  0x19   : > { %s249_s5 = scalar_select %p248_p13, %s723_s15, 3 }
  0x1a   : > { %s540_s6 = sshll.u32 %s247_s4, 3  ;;  %s243_s4 = sand.u32 1, %s715_s13  }
  0x1b   : > { %s539_s7 = sshll.u32 %s249_s5, 1  ;;  %s549_s5 = sshll.u32 %s727_s16, 2 }
  0x1c   : > { %s255_s8 = sadd.s32 %s540_s6, %s539_s7  ;;  %s409_s6 = sadd.s32 %s723_s15, %s549_s5 }
  0x1d   : > { %s541_s9 = sshll.u32 %s255_s8, 3  ;;  %s550_s7 = sshll.u32 %s409_s6, 4 }
  0x1e   : > { %s257_s20 = scalar_lea.vmem %s905_s0, %s541_s9  ;;  %s267_s27 = scalar_lea.vmem %s906_s1, %s541_s9 }
  0x1f   : > { %v272_v0 = vld [vmem:[%s257_s20] sm:$0xff]  ;;  %v273_v1 = vld [vmem:[%s257_s20 + $0x8] sm:$0xff]  ;;  %s244_s8 = scalar_lea.vmem [#allocation2], %s243_s4  ;;  %s852_s20 = scalar_lea.hbm %s908_s3, %s550_s7 }
  0x20   : > { %v274_v2 = vld [vmem:[%s267_s27] sm:$0xff]  ;;  %v568_v3 = vpack.c.bf16 %v273_v1, %v272_v0  ;;  %v275_v4 = vld [vmem:[%s267_s27 + $0x8] sm:$0xff]  ;;  %s413_s9 = sshll.u32 %s244_s8, 4  ;;  %s398_s15 = scalar_lea.sflag [#allocation3], %s243_s4  ;;  %s854_s9 = int_to_ptr.vmem [resolvable:$true] %s413_s9 }
  0x21   : > { %565 = vmatprep.mubr.msk.f32.mxu0 %vm280_vm0, %v274_v2  ;;  %s645_s16 = scalar_lea.vmem %s854_s9, 16  ;;  %s651_s27 = scalar_lea.vmem %s650_s24, 32 }
  0x22   : > { %570 = vmatprep.subr.msk.bf16.mxu0 %vm569_vm1, %v568_v3  ;;  %p646_p0 = scmp.ne.s32.totalorder %s854_s9, %s645_s16  ;;  %p652_p4 = scmp.lt.s32.totalorder %s854_s9, %s650_s24 }
  0x23   : > { %573 = vmatpush3.bf16.xpose.msk.msra.mxu0 %vm569_vm1, %v568_v3  ;;  %p653_p5 = scmp.lt.s32.totalorder %s651_s27, %s645_s16 }
  0x24   : > { %p647_p1 = pnand %p646_p0, %p813_p3 }
  0x25   : > { %p654_p6 = por %p653_p5, %p652_p4 }
  0x26   : > { %p648_p2 = pneg %p647_p1 }
  0x28   : > { %p655_p7 = pnand %p654_p6, %p648_p2 }
  0x2a   : > { %566 = vmatmul.mubr.msk.f32.vlgmr.msra.gmra.mrb[0].mxu0 %vm280_vm0, %v275_v4 }
  0xfd   : > { %v567_v8 = vpop.f32.mrb[0].mxu0 }
  0xfe   : > { %v369_v9 = vmul.f32 %v567_v8, %v556_v6  ;;  %v383_v10 = vsel %vm381_vm2, %v567_v8, -inf  ;;  %v359_v11 = vpop.f32.mrb[1].mxu0 }
  0xff   : > { %v385_v12 = vsel %vm370_vm3, %v383_v10, -inf  ;;  %v368_v13 = vmul.f32 %v555_v7, %v359_v11  ;;  %v382_v14 = vsel %vm380_vm4, %v359_v11, -inf }
 0x100   : > { %v372_v15 = vsel %vm370_vm3, %v369_v9, 0.0  ;;  %v384_v16 = vsel %vm370_vm3, %v382_v14, -inf }
 0x101   : > { %v371_v17 = vsel %vm370_vm3, %v368_v13, 0.0  ;;  %v386_v18 = vmax.f32 %v384_v16, %v385_v12 }
 0x102   : > { %v373_v19 = vadd.f32 %v372_v15, %v371_v17 }
 0x103   : > { %v387_v20 = vrot.slane %v386_v18, 4 }
 0x104   : > { %v374_v21 = vrot.slane %v373_v19, 4 }
 0x105   : > { %v388_v22 = vmax.f32 %v386_v18, %v387_v20 }
 0x106   : > { %v375_v23 = vadd.f32 %v374_v21, %v373_v19 }
 0x107   : > { %v389_v24 = vrot.slane %v388_v22, 2 }
 0x108   : > { %v376_v25 = vrot.slane %v375_v23, 2 }
 0x109   : > { %v390_v26 = vmax.f32 %v388_v22, %v389_v24 }
 0x10a   : > { %v377_v27 = vadd.f32 %v376_v25, %v375_v23 }
 0x10b   : > { %v391_v29 = vrot.slane %v390_v26, 1 }
 0x10c   : > { %v378_v28 = vrot.slane %v377_v27, 1 }
 0x10d   : > { %v392_v31 = vmax.f32 %v390_v26, %v391_v29 }
 0x10e   : > { %v379_v30 = vadd.f32 %v378_v28, %v377_v27 }
 0x110   : > { %v393_v32 = vmul.f32 0.0625, %v379_v30 }
 0x112   : > { %v394_v33 = vsub.f32 %v392_v31, %v393_v32 }
 0x114   : > { %396 = vst.msk [vmem:[%s244_s8] sm:$0x1] %vm395_vm5, %v394_v33 }
 0x115   : > { %658 = shalt.err (!%p655_p7)
}
 0x116   : > { %s659_s28 = scalar_lea.hbm %s852_s20, 16  ;;  %s663_s5 = scalar_lea.hbm %s908_s3, 128 }
 0x117   : > { %p660_p9 = scmp.ne.s32.totalorder %s852_s20, %s659_s28  ;;  %p664_p12 = scmp.lt.u32.totalorder %s852_s20, %s908_s3 }
 0x118   : > { %p665_p13 = scmp.lt.u32.totalorder %s663_s5, %s659_s28  ;;  %p667_p1 = scmp.lt.u32.totalorder %s659_s28, %s852_s20 }
 0x119   : > { %p661_p10 = pnand %p660_p9, %p813_p3 }
 0x11a   : > { %p666_p0 = por %p665_p13, %p664_p12 }
 0x11b   : > { %p662_p11 = pneg %p661_p10 }
 0x11c   : > { %p668_p2 = por %p667_p1, %p666_p0 }
 0x11e   : > { %p669_p4 = pnand %p668_p2, %p662_p11 }
 0x120   : > { %672 = shalt.err (!%p669_p4)
}
 0x121   : > { %574 = dma.vmem_to_hbm [thread:$0]  (%p813_p3), %s854_s9, 16, %s852_s20, %s398_s15  }
 0x122 PF: > { %p580_p5 = scmp.ge.s32.totalorder %s739_s19, 2  ;;  %s425_s8 = sand.u32 1, %s711_s12  }
 0x123   : > { %s426_s10 = scalar_lea.sflag [#allocation3], %s425_s8 }
 0x124   : > { %p577_p6 = pnand %p580_p5, %p822_p8 }
 0x126   : > { %706 = dma.done.wait (!%p577_p6), %s426_s10, 16  }
 0x127   : > { %708 = vsyncadd (!%p577_p6), %s426_s10, 4294967280  ;;  %s16_s19 = sadd.s32 1, %s739_s19   ;;  %s911_s12 = smov %s715_s13 }
 0x128   : > { %p13_p7 = scmp.ge.s32.totalorder %s16_s19, 10   ;;  %s912_s13 = smov %s719_s14 }
 0x129   : > { %s913_s14 = smov %s831_s30  ;;  %s914_s15 = smov %s731_s17 }
 0x12a   : > { %s915_s16 = smov %s735_s18  ;;  %s916_s17 = smov %s919_s22 }
 0x12b   : > { %s917_s18 = smov %s923_s23  ;;  %15 = sbr.rel (!%p13_p7) target bundleno = 5 (0x5), region = 73 }
 0x132   :  { %430 = vsyncpa [#allocation3], 1 }
 0x133   :  { %432 = vsyncpa [#allocation3 + $0x1], 1 }

</bundles_post_ra>
